<compile_context>
chip_gen: v7x
topology: tpu7x:2x2x1
jax: 0.10.0
libtpu: 0.0.40
codegen_flags: <defaults>
</compile_context>

<pallas_src>
import functools

import jax
import jax.numpy as jnp
from jax import lax
from jax.experimental import pallas as pl
from jax.experimental.pallas import tpu as pltpu

_INV_SQRT2 = 0.7071067811865476        # 1/sqrt(2)
_SQRT_2_OVER_PI = 0.7978845608028654   # sqrt(2/pi), for the tanh approximation


def _gelu_f32(x_f32, approximate):
    if approximate == "tanh":
        # torch F.gelu(approximate='tanh'); the tanh runs on the EUP slot.
        inner = _SQRT_2_OVER_PI * (x_f32 + 0.044715 * x_f32 * x_f32 * x_f32)
        return 0.5 * x_f32 * (1.0 + jnp.tanh(inner))
    # torch.nn.functional.gelu default (exact, erf-based), computed in f32.
    return 0.5 * x_f32 * (1.0 + lax.erf(x_f32 * jnp.float32(_INV_SQRT2)))


def _is_narrow_float(dtype):
    return jnp.issubdtype(dtype, jnp.floating) and jnp.dtype(dtype).itemsize < 4


def _product(x1, g_f32, out_dtype):
    if _is_narrow_float(out_dtype):
        # Native-dtype multiply: bf16/f16 VALU packs 2 elems/op on v6e/v7x.
        # Differs from an all-f32 product by <= 1 ulp of the narrow dtype.
        return x1 * g_f32.astype(out_dtype)
    return (x1.astype(jnp.float32) * g_f32).astype(out_dtype)


def _geglu_split_kernel(x1_ref, x2_ref, o_ref, *, approximate):
    # x1_ref, x2_ref, o_ref: (ROW_BLK, COL_BLK) -- the two halves arrive as
    # separate lane-aligned tiles, no in-kernel slicing / relayout.
    g = _gelu_f32(x2_ref[...].astype(jnp.float32), approximate)
    o_ref[...] = _product(x1_ref[...], g, o_ref.dtype)


def _geglu_fused_kernel(x_ref, o_ref, *, approximate):
    # Fallback only when H is not lane-aligned (H % 128 != 0): the block is
    # the full (ROW_BLK, 2H) row slab and the halves are sliced in-kernel.
    # TODO(synk): retire this path (per review) with a layout-friendly split
    # for non-128-multiple H; it pays a per-block relayout for the unaligned
    # slice and masked output stores.  It is rarely hit for real GEGLU sizes.
    h = o_ref.shape[-1]
    g = _gelu_f32(x_ref[:, h:].astype(jnp.float32), approximate)
    o_ref[...] = _product(x_ref[:, :h], g, o_ref.dtype)


def _x2_index_map(i, j, off):
    return (i, j + off)


def _cdiv(a, b):
    return -(-a // b)


def _round_up(v, mult):
    return _cdiv(v, mult) * mult


def _vmem_config():
    """(scoped vmem limit bytes, per-tile byte budget), generation-aware."""
    # Defaults are safe for the smallest-VMEM generation (v7x: 64 MiB per TC):
    # 3 arrays x 2 pipeline buffers x 6 MiB ~= 36 MiB, well under a 48 MiB cap.
    vmem_limit = 48 * 1024 * 1024
    per_block_budget = 6 * 1024 * 1024
    big_vmem = False
    try:
        kind = jax.devices()[0].device_kind.lower()
        # 128-MiB-VMEM generations (v4 / v5e / v5p / v6e "trillium").
        big_vmem = any(t in kind for t in ("v4", "v5", "v6", "trillium"))
    except Exception:
        pass
    try:
        cap = getattr(pltpu.get_tpu_info(), "vmem_capacity_bytes", None)
        if cap is not None and cap < 96 * 1024 * 1024:
            big_vmem = False
    except Exception:
        pass
    if big_vmem:
        vmem_limit = 96 * 1024 * 1024
        per_block_budget = 12 * 1024 * 1024
    return vmem_limit, per_block_budget


def _pick_row_block(m, col_elems, itemsize, budget_bytes, n_col_blocks, sublane):
    """Row tile: fits the VMEM budget, sublane-aligned, ~>=8 total grid steps."""
    if m <= sublane:
        return max(1, m)
    rb = max(sublane, budget_bytes // max(1, col_elems * itemsize))
    rb = max(sublane, (rb // sublane) * sublane)
    rb = min(rb, 4096)
    # Keep the pipeline in steady state: aim for >= 8 total grid steps so
    # DMA-in / compute / DMA-out overlap, and v7x's two TensorCores each get
    # several steps.  Only tiny row counts fall below this.
    target_row_steps = max(2, _cdiv(8, max(1, n_col_blocks)))
    if m > target_row_steps * sublane:
        rb = min(rb, _round_up(_cdiv(m, target_row_steps), sublane))
    # Never make a block taller than the (sublane-aligned) array.
    rb = min(rb, (m // sublane) * sublane)
    return max(sublane, rb)


def geglu(x, *, approximate="none"):
    """x: array of shape (..., 2*H). Returns (..., H) = x1 * gelu(x2)."""
    *lead, two_h = x.shape
    assert two_h % 2 == 0, "last dim must be even for GEGLU"
    h = two_h // 2
    m = 1
    for d in lead:
        m *= d
    if m == 0 or h == 0:
        return jnp.zeros((*lead, h), x.dtype)

    x2d = x.reshape(m, two_h)
    itemsize = jnp.dtype(x.dtype).itemsize
    sublane = max(8, 32 // itemsize)          # 8 / 16 / 32 rows for 4/2/1-byte dtypes
    vmem_limit, per_block_budget = _vmem_config()

    if h % 128 == 0:
        # Column tile = full half-width H whenever a (sublane x H) slab fits
        # the budget (true for any realistic H): maximally contiguous DMAs,
        # lane-dense unmasked stores, no divisor search.  Only a gigantic H
        # falls back to the largest multiple-of-128 divisor that fits.
        max_cols = max(128, (per_block_budget // (sublane * itemsize)) // 128 * 128)
        if h <= max_cols:
            hb = h
        else:
            hb = 128
            d = (max_cols // 128) * 128
            while d >= 128:
                if h % d == 0:
                    hb = d
                    break
                d -= 128
        n_col_blocks = h // hb
        rb = _pick_row_block(m, hb, itemsize, per_block_budget, n_col_blocks, sublane)
        # Row axis leads so the megacore split lands on the axis with the most
        # grid steps.
        grid = (_cdiv(m, rb), n_col_blocks)

        kernel = functools.partial(_geglu_split_kernel, approximate=approximate)
        out2d = pl.pallas_call(
            kernel,
            out_shape=jax.ShapeDtypeStruct((m, h), x.dtype),
            grid_spec=pltpu.PrefetchScalarGridSpec(
                num_scalar_prefetch=0,
                grid=grid,
                in_specs=[
                    # x1 half: columns [0, H)
                    pl.BlockSpec((rb, hb), lambda i, j: (i, j)),
                    # x2 half: columns [H, 2H) (block-index offset = H // hb)
                    pl.BlockSpec(
                        (rb, hb),
                        functools.partial(_x2_index_map, off=n_col_blocks),
                    ),
                ],
                out_specs=pl.BlockSpec((rb, hb), lambda i, j: (i, j)),
            ),
            compiler_params=pltpu.CompilerParams(
                dimension_semantics=("parallel", "parallel"),
                vmem_limit_bytes=vmem_limit,
            ),
        )(x2d, x2d)
    else:
        # Rare non-lane-aligned H: load the full (rb, 2H) row slab and split
        # inside the kernel (block last dim equals the full array dim).
        rb = _pick_row_block(m, two_h, itemsize, per_block_budget, 1, sublane)
        grid = (_cdiv(m, rb),)
        kernel = functools.partial(_geglu_fused_kernel, approximate=approximate)
        out2d = pl.pallas_call(
            kernel,
            out_shape=jax.ShapeDtypeStruct((m, h), x.dtype),
            grid_spec=pltpu.PrefetchScalarGridSpec(
                num_scalar_prefetch=0,
                grid=grid,
                in_specs=[pl.BlockSpec((rb, two_h), lambda i: (i, 0))],
                out_specs=pl.BlockSpec((rb, h), lambda i: (i, 0)),
            ),
            compiler_params=pltpu.CompilerParams(
                dimension_semantics=("parallel",),
                vmem_limit_bytes=vmem_limit,
            ),
        )(x2d)

    # TODO(synk): beating the HBM roofline requires fusing GEGLU into the
    # producing matmul's epilogue so the 2H intermediate never round-trips
    # HBM; that is an upstream-op change, not a change to this kernel.
    return out2d.reshape(*lead, h)


def geglu_ref(x, approximate="none"):
    h = x.shape[-1] // 2
    x1, x2 = x[..., :h], x[..., h:]
    g = _gelu_f32(x2.astype(jnp.float32), approximate)
    return (x1.astype(jnp.float32) * g).astype(x.dtype)


if __name__ == "__main__":
    key = jax.random.PRNGKey(0)
    k0, k1, k2 = jax.random.split(key, 3)

    # Module-consistent small shape: batch=2, seq=8, hidden=2H=256 (H=128).
    x = jax.random.normal(k0, (2, 8, 256), dtype=jnp.float32)
    out = geglu(x)
    jax.block_until_ready(out)
    ref = geglu_ref(x)
    assert out.shape == (2, 8, 128), out.shape
    assert jnp.allclose(out, ref, atol=1e-5, rtol=1e-5), float(
        jnp.max(jnp.abs(out - ref))
    )

    # Ragged row count (3*7 = 21 rows) -> masked-tail row block, no padding.
    xr = jax.random.normal(k1, (3, 7, 256), dtype=jnp.float32)
    outr = geglu(xr)
    jax.block_until_ready(outr)
    refr = geglu_ref(xr)
    assert outr.shape == (3, 7, 128), outr.shape
    assert jnp.allclose(outr, refr, atol=1e-5, rtol=1e-5), float(
        jnp.max(jnp.abs(outr - refr))
    )

    # bf16, more rows -> multi-step grid (pipeline steady state), 16-row
    # sublane packing, and the native-dtype product path (<= ~1 ulp vs f32).
    xb = jax.random.normal(k2, (4, 64, 512), dtype=jnp.bfloat16)
    outb = geglu(xb)
    jax.block_until_ready(outb)
    refb = geglu_ref(xb)
    assert outb.shape == (4, 64, 256), outb.shape
    assert jnp.allclose(
        outb.astype(jnp.float32), refb.astype(jnp.float32), atol=5e-2, rtol=5e-2
    ), float(jnp.max(jnp.abs(outb.astype(jnp.float32) - refb.astype(jnp.float32))))

    print("KERNEL_OK")
</pallas_src>

<mosaic_0001>
module attributes {stable_mosaic.version = 11 : i64} {
  func.func @_geglu_split_kernel(%arg0: i32, %arg1: i32, %arg2: memref<16x128xf32, #tpu.memory_space<vmem>>, %arg3: memref<16x128xf32, #tpu.memory_space<vmem>>, %arg4: memref<16x128xf32, #tpu.memory_space<vmem>>) attributes {dimension_semantics = [#tpu.dimension_semantics<parallel>, #tpu.dimension_semantics<parallel>], iteration_bounds = array<i64: 1, 1>, scalar_prefetch = 0 : i64, scratch_operands = 0 : i64, tpu.core_type = #tpu.core_type<tc>, window_params = [{transform_indices = @transform_0, window_bounds = array<i64: 16, 128>}, {transform_indices = @transform_1, window_bounds = array<i64: 16, 128>}, {transform_indices = @transform_2, window_bounds = array<i64: 16, 128>}]} {
    %c0 = arith.constant 0 : index
    %c0_0 = arith.constant 0 : index
    %0 = vector.load %arg3[%c0, %c0_0] : memref<16x128xf32, #tpu.memory_space<vmem>>, vector<16x128xf32>
    %cst = arith.constant 5.000000e-01 : f32
    %1 = vector.broadcast %cst : f32 to vector<16x128xf32>
    %2 = arith.mulf %1, %0 : vector<16x128xf32>
    %cst_1 = arith.constant 0.707106769 : f32
    %3 = vector.broadcast %cst_1 : f32 to vector<16x128xf32>
    %4 = arith.mulf %0, %3 : vector<16x128xf32>
    %5 = math.erf %4 : vector<16x128xf32>
    %cst_2 = arith.constant 1.000000e+00 : f32
    %6 = vector.broadcast %cst_2 : f32 to vector<16x128xf32>
    %7 = arith.addf %6, %5 : vector<16x128xf32>
    %8 = arith.mulf %2, %7 : vector<16x128xf32>
    %c0_3 = arith.constant 0 : index
    %c0_4 = arith.constant 0 : index
    %9 = vector.load %arg2[%c0_3, %c0_4] : memref<16x128xf32, #tpu.memory_space<vmem>>, vector<16x128xf32>
    %10 = arith.mulf %9, %8 : vector<16x128xf32>
    %c0_5 = arith.constant 0 : index
    %c0_6 = arith.constant 0 : index
    %11 = vector.load %arg4[%c0_5, %c0_6] : memref<16x128xf32, #tpu.memory_space<vmem>>, vector<16x128xf32>
    tpu.vector_store %arg4[%c0_5, %c0_6], %10 {strides = array<i32>} : memref<16x128xf32, #tpu.memory_space<vmem>>, vector<16x128xf32>,
    return
  }
  func.func @transform_0(%arg0: i32, %arg1: i32) -> (i32, i32) {
    %c0_i32 = arith.constant 0 : i32
    return %arg0, %arg1 : i32, i32
  }
  func.func @transform_1(%arg0: i32, %arg1: i32) -> (i32, i32) {
    %c1_i32 = arith.constant 1 : i32
    %0 = arith.addi %arg1, %c1_i32 : i32
    %c0_i32 = arith.constant 0 : i32
    return %arg0, %0 : i32, i32
  }
  func.func @transform_2(%arg0: i32, %arg1: i32) -> (i32, i32) {
    %c0_i32 = arith.constant 0 : i32
    return %arg0, %arg1 : i32, i32
  }
}

</mosaic_0001>

<bundles_post_ra>
// kernel: tpu_custom_call.1
= control target key start
LH: loop header
LB: loop body
LE: loop exit
PB: predicated region body
PF: predicated region fallthrough
CT: control target
= control target key end

     0   :  { %7 = vsyncpa [#allocation3], 0  ;;  %s233_s0 = inlined_call_operand.hbm [shape: f32[16,256], index: 0, kind: input, shape index: {}]   ;;  %s234_s1 = inlined_call_operand.hbm [shape: f32[16,256], index: 1, kind: input, shape index: {}]   ;;  %s235_s2 = inlined_call_operand.hbm [shape: f32[16,128], index: 2, kind: output, shape index: {}]  }
   0x1   :  { %8 = vsyncpa [#allocation6], 0 }
   0x2   :  { %9 = vsyncpa [#allocation4], 0  ;;  %s166_s9 = smov [#allocation2]   ;;  %s91_s13 = scalar_lea.hbm %s233_s0, 256 }
   0x3   :  { %s15_s10 = sshll.u32 %s166_s9, 4  ;;  %p92_p0 = scmp.ne.s32.totalorder %s233_s0, %s91_s13  ;;  %s16_s10 = int_to_ptr.vmem [resolvable:$true] %s15_s10 }
   0x4   :  { %s93_s18 = scalar_lea.hbm %s233_s0, 512  ;;  %p95_p2 = scmp.lt.u32.totalorder %s91_s13, %s233_s0 }
   0x5   :  { %p94_p1 = scmp.lt.u32.totalorder %s93_s18, %s91_s13 }
   0x7   :  { %p96_p3 = por %p95_p2, %p94_p1 }
   0x9   :  { %p97_p4 = pnand %p96_p3, %p92_p0 }
   0xb   :  { %100 = shalt.err (!%p97_p4)
}
   0xc   :  { %s101_s21 = scalar_lea.vmem %s16_s10, 256  ;;  %p106_p6 = scmp.lt.s32.totalorder %s16_s10, %s16_s10 }
   0xd   :  { %p102_p5 = scmp.ne.s32.totalorder %s16_s10, %s101_s21  ;;  %p107_p7 = scmp.lt.s32.totalorder %s101_s21, %s101_s21 }
   0xf   :  { %p108_p8 = por %p107_p7, %p106_p6 }
  0x11   :  { %p109_p9 = pnand %p108_p8, %p102_p5 }
  0x13   :  { %112 = shalt.err (!%p109_p9)
}
  0x14   :  { %s167_s22 = smov 256   ;;  %s168_s23 = smov 128  }
  0x15   :  { %s169_s24 = smov 8   ;;  %s80_s29 = scalar_lea.hbm %s234_s1, 128 }
  0x16   :  { %21 = dma.hbm_to_vmem [thread:$0]  %s233_s0, 256, %s16_s10, [#allocation3], %s167_s22, %s168_s23, %s169_s24  }
  0x17   :  { %s170_s30 = smov [#allocation5]   ;;  %s137_s6 = scalar_lea.hbm %s234_s1, 384 }
  0x18   :  { %s30_s3 = sshll.u32 %s170_s30, 4  ;;  %p114_p10 = scmp.ne.s32.totalorder %s80_s29, %s137_s6  ;;  %s31_s3 = int_to_ptr.vmem [resolvable:$true] %s30_s3 }
  0x19   :  { %s115_s9 = scalar_lea.hbm %s234_s1, 512  ;;  %p116_p11 = scmp.lt.u32.totalorder %s80_s29, %s234_s1 }
  0x1a   :  { %p117_p12 = scmp.lt.u32.totalorder %s115_s9, %s137_s6  ;;  %p119_p0 = scmp.lt.u32.totalorder %s137_s6, %s80_s29 }
  0x1c   :  { %p118_p13 = por %p117_p12, %p116_p11 }
  0x1e   :  { %p120_p1 = por %p119_p0, %p118_p13 }
  0x20   :  { %p121_p2 = pnand %p120_p1, %p114_p10 }
  0x22   :  { %124 = shalt.err (!%p121_p2)
}
  0x23   :  { %s125_s0 = scalar_lea.vmem %s31_s3, 256  ;;  %p130_p4 = scmp.lt.s32.totalorder %s31_s3, %s31_s3 }
  0x24   :  { %p126_p3 = scmp.ne.s32.totalorder %s31_s3, %s125_s0  ;;  %p131_p5 = scmp.lt.s32.totalorder %s125_s0, %s125_s0 }
  0x26   :  { %p132_p6 = por %p131_p5, %p130_p4 }
  0x28   :  { %p133_p7 = pnand %p132_p6, %p126_p3 }
  0x2a   :  { %136 = shalt.err (!%p133_p7)
}
  0x2b   :  { %36 = dma.hbm_to_vmem [thread:$0]  %s80_s29, 256, %s31_s3, [#allocation6], %s167_s22, %s168_s23, %s169_s24  }
  0x2c   :  { %160 = dma.done.wait [#allocation3], 256  }
  0x2d   :  { %161 = vsyncadd [#allocation3], 4294967040 }
  0x2e   :  { %162 = dma.done.wait [#allocation6], 256  }
  0x2f   :  { %163 = vsyncadd [#allocation6], 4294967040  ;;  %v44_v0 = vld [vmem:[#allocation5] sm:$0xff]  ;;  %v45_v1 = vld [vmem:[#allocation5 + $0x8] sm:$0xff]  ;;  %s171_s1 = smov [#allocation7]  }
  0x30   :  { %v48_v2 = vmul.f32 0.70710677, %v44_v0  ;;  %v49_v3 = vmul.f32 0.70710677, %v45_v1  ;;  %v46_v4 = vmul.f32 0.5, %v44_v0  ;;  %v47_v6 = vmul.f32 0.5, %v45_v1 }
  0x31   :  { %v56_v9 = vld [vmem:[#allocation2] sm:$0xff]  ;;  %v57_v12 = vld [vmem:[#allocation2 + $0x8] sm:$0xff]  ;;  %s67_s10 = sshll.u32 %s171_s1, 4  ;;  %s68_s10 = int_to_ptr.vmem [resolvable:$true] %s67_s10 }
  0x32   :  { %87 = verf.f32 %v48_v2  ;;  %s138_s13 = scalar_lea.vmem %s68_s10, 256  ;;  %p143_p9 = scmp.lt.s32.totalorder %s68_s10, %s68_s10 }
  0x33   :  { %89 = verf.f32 %v49_v3  ;;  %p139_p8 = scmp.ne.s32.totalorder %s68_s10, %s138_s13  ;;  %p144_p10 = scmp.lt.s32.totalorder %s138_s13, %s138_s13 }
  0x35   :  { %p145_p11 = por %p144_p10, %p143_p9 }
  0x37   :  { %p146_p12 = pnand %p145_p11, %p139_p8 }
  0x3c   :  { %v88_v5 = vpop.eup %87 }
  0x3d   :  { %v90_v7 = vpop.eup %89  ;;  %v52_v8 = vadd.f32 1.0, %v88_v5 }
  0x3e   :  { %v53_v10 = vadd.f32 1.0, %v90_v7 }
  0x3f   :  { %v54_v11 = vmul.f32 %v52_v8, %v46_v4 }
  0x40   :  { %v55_v13 = vmul.f32 %v53_v10, %v47_v6 }
  0x41   :  { %v58_v14 = vmul.f32 %v56_v9, %v54_v11 }
  0x42   :  { %v59_v15 = vmul.f32 %v57_v12, %v55_v13 }
  0x43   :  { %60 = vst [vmem:[#allocation7] sm:$0xff] %v58_v14 }
  0x44   :  { %61 = vst [vmem:[#allocation7 + $0x8] sm:$0xff] %v59_v15 }
  0x45   :  { %149 = shalt.err (!%p146_p12)
}
  0x46   :  { %s150_s16 = scalar_lea.hbm %s235_s2, 256 }
  0x47   :  { %p151_p13 = scmp.ne.s32.totalorder %s235_s2, %s150_s16  ;;  %p154_p0 = scmp.lt.u32.totalorder %s150_s16, %s235_s2 }
  0x49   :  { %p156_p1 = pnand %p154_p0, %p151_p13 }
  0x4b   :  { %159 = shalt.err (!%p156_p1)
}
  0x4c   :  { %73 = dma.vmem_to_hbm [thread:$0]  %s68_s10, 256, %s235_s2, [#allocation4], %s168_s23, %s168_s23, %s169_s24  }
  0x4d   :  { %164 = dma.done.wait [#allocation4], 256  }
  0x4e   :  { %165 = vsyncadd [#allocation4], 4294967040 }
  0x4f   :  { %77 = vsyncpa [#allocation3], 1 }
  0x50   :  { %78 = vsyncpa [#allocation6], 1 }
  0x51   :  { %79 = vsyncpa [#allocation4], 1 }

</bundles_post_ra>
